<compile_context>
chip_gen: v5e
topology: v5e:2x2
jax: 0.10.0
libtpu: 0.0.40
codegen_flags: <defaults>
</compile_context>

<pallas_src>
from functools import partial

import numpy as np
import jax
import jax.numpy as jnp
from jax.experimental import pallas as pl
from jax.experimental.pallas import tpu as pltpu


# ----------------------------------------------------------------------------
# Generation-aware VMEM budget and tile defaults
# ----------------------------------------------------------------------------
def _vmem_limit_bytes():
    try:
        cap = int(pltpu.get_tpu_info().vmem_capacity_bytes)
        if cap > 0:
            return min(int(cap * 0.8), 100 * 1024 * 1024)
    except Exception:
        pass
    return 48 * 1024 * 1024        # conservative fallback (safe on v7x's 64 MiB)


_VMEM_LIMIT = _vmem_limit_bytes()
_BIG_VMEM = _VMEM_LIMIT >= 80 * 1024 * 1024     # v5e / v6e (128 MiB physical)
_MM_TILE = 1024 if _BIG_VMEM else 512
_CONV_TILE = 128 if _BIG_VMEM else 64
_RESIZE_TILE = 48 if _BIG_VMEM else 32
_ADPT_TILE = 64 if _BIG_VMEM else 32


def _cp(*sems):
    return pltpu.CompilerParams(dimension_semantics=tuple(sems),
                                vmem_limit_bytes=_VMEM_LIMIT)


def _choose_tile(n, target, mult=1):
    """Row-tile for an axis of length n: <= target; prefer a divisor of n (multiple of
    `mult`); otherwise return a padded tile size (caller pads n up and crops)."""
    if n <= target:
        return n
    lo = max(target // 2, mult, 1)
    for d in range(target, lo - 1, -1):
        if n % d == 0 and d % mult == 0:
            return d
    t = (target // mult) * mult
    return max(t, mult)


def _cdiv(a, b):
    return -(-a // b)


# ----------------------------------------------------------------------------
# In-kernel helper: double-buffered halo-slab DMA
# ----------------------------------------------------------------------------
def _fetch_row_slab(hbm_ref, buf, sem, n, t, *, TH, n_tiles):
    """Fetch rows [t*TH, t*TH + TIN) of image `n` from an HBM ref (N, rows, W, C) into
    the VMEM scratch `buf` (2, TIN, W, C), double-buffered across the t grid axis."""
    TIN = buf.shape[1]

    def start(tt, slot):
        pltpu.make_async_copy(hbm_ref.at[n, pl.ds(tt * TH, TIN)],
                              buf.at[slot], sem.at[slot]).start()

    @pl.when(t == 0)
    def _():
        start(t, 0)

    @pl.when(t + 1 < n_tiles)
    def _():
        start(t + 1, (t + 1) % 2)

    slot = t % 2
    pltpu.make_async_copy(hbm_ref.at[n, pl.ds(0, TIN)],
                          buf.at[slot], sem.at[slot]).wait()
    return slot


# ----------------------------------------------------------------------------
# Pallas kernels
# ----------------------------------------------------------------------------
def _matmul_kernel(x_ref, w_ref, b_ref, o_ref, *, act, pre_relu):
    x = x_ref[...]
    if pre_relu:
        x = jnp.maximum(x, 0.0)
    acc = jnp.dot(x.astype(jnp.bfloat16), w_ref[...],
                  preferred_element_type=jnp.float32) + b_ref[0]
    if act == "relu":
        acc = jnp.maximum(acc, 0.0)
    elif act == "sigmoid":
        acc = jax.nn.sigmoid(acc)
    o_ref[...] = acc.astype(o_ref.dtype)


def _conv_kernel(xp_hbm, w_ref, b_ref, *rest, K, TH, Wo, Cin, Cout,
                 n_tiles, pre_relu, act, has_res):
    """KxK stride-1 conv on a DMA'd, zero-padded bf16 row slab (TIN, Wp, Cin)."""
    if has_res:
        r_ref, o_ref, buf, sem = rest
    else:
        o_ref, buf, sem = rest
        r_ref = None
    n = pl.program_id(0)
    t = pl.program_id(1)
    slot = _fetch_row_slab(xp_hbm, buf, sem, n, t, TH=TH, n_tiles=n_tiles)
    x = buf[slot]                                     # (TIN, Wp, Cin) bf16
    if pre_relu:
        x = jnp.maximum(x, 0)
    w = w_ref[...]                                    # (K, K*Cin, Cout) bf16
    acc = jnp.zeros((TH * Wo, Cout), jnp.float32)
    if Cin >= 128:
        # contraction already MXU-deep: per-tap dots, no im2col copies
        for kh in range(K):
            band = x[kh:kh + TH]
            for kw in range(K):
                patch = band[:, kw:kw + Wo, :].reshape(TH * Wo, Cin)
                acc = acc + jnp.dot(patch, w[kh, kw * Cin:(kw + 1) * Cin],
                                    preferred_element_type=jnp.float32)
    else:
        # small Cin: fatten the contraction with a kw im2col per kh
        for kh in range(K):
            band = x[kh:kh + TH]
            patch = jnp.concatenate([band[:, kw:kw + Wo, :] for kw in range(K)], axis=-1)
            acc = acc + jnp.dot(patch.reshape(TH * Wo, K * Cin), w[kh],
                                preferred_element_type=jnp.float32)
    acc = acc + b_ref[0]
    if act == "relu":
        acc = jnp.maximum(acc, 0.0)
    elif act == "sigmoid":
        acc = jax.nn.sigmoid(acc)
    if has_res:
        acc = acc + r_ref[0].reshape(TH * Wo, Cout)
    o_ref[0] = acc.reshape(TH, Wo, Cout).astype(o_ref.dtype)


def _adapter_sam_kernel(f_hbm, cam_ref, sam_ref, aw_ref, ab_ref, o_ref, buf, sem, *,
                        TH, W, C, n_tiles):
    """Row-tiled CBAM tail: CAM-weighted channel stats -> 7x7 SAM conv -> sigmoid ->
    high/context split -> first 1x1 conv + ReLU, fused (width-1 maps never hit HBM)."""
    n = pl.program_id(0)
    t = pl.program_id(1)
    slot = _fetch_row_slab(f_hbm, buf, sem, n, t, TH=TH, n_tiles=n_tiles)
    f = buf[slot]                                      # (TIN=TH+6, W, C) bf16
    TIN = f.shape[0]
    cam = cam_ref[0, 0].astype(jnp.float32)            # (C,)

    xw = f.astype(jnp.float32) * cam                   # (TIN, W, C)
    mean_map = jnp.mean(xw, axis=2)                    # (TIN, W)
    max_map = jnp.max(xw, axis=2)
    zc = jnp.zeros((TIN, 3), jnp.float32)
    pm = jnp.concatenate([zc, mean_map, zc], axis=1)   # (TIN, W + 6)
    px = jnp.concatenate([zc, max_map, zc], axis=1)
    acc = jnp.zeros((TH, W), jnp.float32)
    for kh in range(7):                                # 7x7 conv, 2 in channels: VPU FMAs
        for kw in range(7):
            wm = sam_ref[(kh * 7 + kw) * 2 + 0]
            wx = sam_ref[(kh * 7 + kw) * 2 + 1]
            acc = acc + wm * pm[kh:kh + TH, kw:kw + W] + wx * px[kh:kh + TH, kw:kw + W]
    attn = jax.nn.sigmoid(acc).reshape(TH * W, 1)

    # concat([feat*a, feat, feat*(1-a)]) @ W == high@W[:C] + feat@W[C:2C] + ctx@W[2C:]
    fm = f[3:3 + TH].reshape(TH * W, C).astype(jnp.float32)
    high = fm * attn
    ctx = fm - high
    aw = aw_ref[...]                                   # (3C, 3C) bf16
    out = (jnp.dot(high.astype(jnp.bfloat16), aw[:C], preferred_element_type=jnp.float32)
           + jnp.dot(fm.astype(jnp.bfloat16), aw[C:2 * C], preferred_element_type=jnp.float32)
           + jnp.dot(ctx.astype(jnp.bfloat16), aw[2 * C:], preferred_element_type=jnp.float32))
    out = jnp.maximum(out + ab_ref[0], 0.0)
    o_ref[0] = out.reshape(TH, W, 3 * C).astype(o_ref.dtype)


def _resize_kernel(x_ref, a_ref, b_ref, o_ref, *, TH, W, C, OW):
    """Separable bilinear resize: height matmul + one batched width contraction."""
    a = a_ref[0].astype(jnp.bfloat16)                                  # (TH, H)
    rows = jnp.dot(a, x_ref[0], preferred_element_type=jnp.float32)    # (TH, W*C)
    rows3 = rows.reshape(TH, W, C).astype(jnp.bfloat16)
    bm = jnp.broadcast_to(b_ref[...].astype(jnp.bfloat16)[None], (TH, OW, W))
    out = jax.lax.dot_general(bm, rows3,
                              dimension_numbers=(((2,), (1,)), ((0,), (0,))),
                              preferred_element_type=jnp.float32)      # (TH, OW, C)
    o_ref[0] = out.astype(o_ref.dtype)


def _out_head_kernel(xp_hbm, w1_ref, b1_ref, w2_ref, b2_ref, o_ref, buf, sem, *,
                     TH, W, Cin, Cmid, n_tiles):
    """output_conv2: 3x3 conv + ReLU + 1x1 conv + ReLU, lane-dense (TH, W) output."""
    n = pl.program_id(0)
    t = pl.program_id(1)
    slot = _fetch_row_slab(xp_hbm, buf, sem, n, t, TH=TH, n_tiles=n_tiles)
    x = buf[slot]                                      # (TH + 2, W + 2, Cin) bf16
    w1 = w1_ref[...]                                   # (3, 3*Cin, Cmid) bf16
    acc = jnp.zeros((TH * W, Cmid), jnp.float32)
    for kh in range(3):
        band = x[kh:kh + TH]
        patch = jnp.concatenate([band[:, kw:kw + W, :] for kw in range(3)], axis=-1)
        acc = acc + jnp.dot(patch.reshape(TH * W, 3 * Cin), w1[kh],
                            preferred_element_type=jnp.float32)
    acc = jnp.maximum(acc + b1_ref[0], 0.0)            # (TH*W, Cmid)
    h3 = acc.reshape(TH, W, Cmid)
    d = jnp.sum(h3 * w2_ref[...].reshape(1, 1, Cmid), axis=-1) + b2_ref[0]
    o_ref[0] = jnp.maximum(d, 0.0).astype(o_ref.dtype)


# ----------------------------------------------------------------------------
# Pallas wrappers
# ----------------------------------------------------------------------------
def matmul(x, w, b=None, act=None, pre_relu=False, row_tile=None):
    M, Kd = x.shape
    Ncols = w.shape[1]
    if b is None:
        b = jnp.zeros((1, Ncols), jnp.float32)
    if row_tile is None:
        row_tile = _MM_TILE
    TM = _choose_tile(M, row_tile, mult=8)
    n_t = _cdiv(M, TM)
    Mp = n_t * TM
    xp = x if Mp == M else jnp.pad(x, ((0, Mp - M), (0, 0)))
    wb = w.astype(jnp.bfloat16)
    y = pl.pallas_call(
        partial(_matmul_kernel, act=act, pre_relu=pre_relu),
        grid=(n_t,),
        in_specs=[pl.BlockSpec((TM, Kd), lambda i: (i, 0)),
                  pl.BlockSpec((Kd, Ncols), lambda i: (0, 0)),
                  pl.BlockSpec((1, Ncols), lambda i: (0, 0))],
        out_specs=pl.BlockSpec((TM, Ncols), lambda i: (i, 0)),
        out_shape=jax.ShapeDtypeStruct((Mp, Ncols), jnp.float32),
        compiler_params=_cp("parallel"),
    )(xp, wb, b)
    return y if Mp == M else y[:M]


def _strided_conv_im2col(x, w, b, *, stride, padding, act):
    """Direct strided conv via a K*K im2col gather (only the tiny stride-2 resize conv
    at patch resolution goes through here)."""
    N, H, W, Cin = x.shape
    K = w.shape[0]
    Cout = w.shape[-1]
    Ho = (H + 2 * padding - K) // stride + 1
    Wo = (W + 2 * padding - K) // stride + 1
    xp = jnp.pad(x, ((0, 0), (padding, padding), (padding, padding), (0, 0)))
    cols = []
    for kh in range(K):
        for kw in range(K):
            cols.append(xp[:, kh:kh + Ho * stride:stride, kw:kw + Wo * stride:stride, :])
    patches = jnp.concatenate(cols, axis=-1)           # (N, Ho, Wo, K*K*Cin)
    y = matmul(patches.reshape(N * Ho * Wo, K * K * Cin),
               w.reshape(K * K * Cin, Cout), b, act=act)
    return y.reshape(N, Ho, Wo, Cout)


def _conv3x3(x, w, b, *, padding, pre_relu, act, residual, row_tile):
    """KxK stride-1 conv, row-tiled; halo slab DMA'd from HBM (no wrapper duplication)."""
    N, H, W, Cin = x.shape
    K = w.shape[0]
    Cout = w.shape[-1]
    Ho = H + 2 * padding - K + 1
    Wo = W + 2 * padding - K + 1
    Wp = W + 2 * padding
    TH = _choose_tile(Ho, row_tile)
    n_t = _cdiv(Ho, TH)
    Hot = n_t * TH
    TIN = TH + K - 1
    xp = jnp.pad(x.astype(jnp.bfloat16),
                 ((0, 0), (padding, padding + (Hot - Ho)), (padding, padding), (0, 0)))
    wr = w.reshape(K, K * Cin, Cout).astype(jnp.bfloat16)

    in_specs = [pl.BlockSpec(memory_space=pl.ANY),
                pl.BlockSpec((K, K * Cin, Cout), lambda n, t: (0, 0, 0)),
                pl.BlockSpec((1, Cout), lambda n, t: (0, 0))]
    args = [xp, wr, b]
    has_res = residual is not None
    if has_res:
        r = residual if Hot == Ho else jnp.pad(residual,
                                               ((0, 0), (0, Hot - Ho), (0, 0), (0, 0)))
        in_specs.append(pl.BlockSpec((1, TH, Wo, Cout), lambda n, t: (n, t, 0, 0)))
        args.append(r)

    y = pl.pallas_call(
        partial(_conv_kernel, K=K, TH=TH, Wo=Wo, Cin=Cin, Cout=Cout, n_tiles=n_t,
                pre_relu=pre_relu, act=act, has_res=has_res),
        grid=(N, n_t),
        in_specs=in_specs,
        out_specs=pl.BlockSpec((1, TH, Wo, Cout), lambda n, t: (n, t, 0, 0)),
        out_shape=jax.ShapeDtypeStruct((N, Hot, Wo, Cout), jnp.float32),
        scratch_shapes=[pltpu.VMEM((2, TIN, Wp, Cin), jnp.bfloat16),
                        pltpu.SemaphoreType.DMA((2,))],
        compiler_params=_cp("parallel", "arbitrary"),
    )(*args)
    return y if Hot == Ho else y[:, :Ho]


def conv2d(x, w, b, *, stride=1, padding=0, pre_relu=False, act=None,
           residual=None, row_tile=None):
    """Conv2d, NHWC / HWIO.  1x1 -> tiled matmul; stride>1 -> direct im2col matmul;
    KxK stride 1 -> row-tiled direct conv with a DMA'd halo slab per grid step."""
    N, H, W, Cin = x.shape
    K = w.shape[0]
    Cout = w.shape[-1]
    if K == 1 and stride == 1:
        y = matmul(x.reshape(N * H * W, Cin), w.reshape(Cin, Cout), b,
                   act=act, pre_relu=pre_relu)
        y = y.reshape(N, H, W, Cout)
        if residual is not None:
            y = y + residual
        return y
    if stride != 1:
        assert not pre_relu and residual is None, "strided conv: pre_relu/residual unsupported"
        return _strided_conv_im2col(x, w, b, stride=stride, padding=padding, act=act)
    return _conv3x3(x, w, b, padding=padding, pre_relu=pre_relu, act=act,
                    residual=residual, row_tile=row_tile or _CONV_TILE)


def conv_transpose_same(x, w_mat, b_tiled, K):
    """ConvTranspose2d with kernel_size == stride, padding 0 (channel matmul + shuffle).
    TODO(synk): verify the (K,K,Cout) column permutation when loading real torch weights."""
    N, H, W, Cin = x.shape
    Cout = w_mat.shape[1] // (K * K)
    y = matmul(x.reshape(N * H * W, Cin), w_mat, b_tiled)       # (N*H*W, K*K*Cout)
    y = y.reshape(N, H, W, K, K, Cout)
    y = jnp.transpose(y, (0, 1, 3, 2, 4, 5)).reshape(N, H * K, W * K, Cout)
    return y


def _interp_matrix(n_out, n_in):
    """Dense bilinear (align_corners=True) interpolation matrix, 1-D (numpy)."""
    A = np.zeros((n_out, n_in), np.float32)
    if n_out == 1:
        A[0, 0] = 1.0
        return A
    for i in range(n_out):
        src = i * (n_in - 1) / (n_out - 1)
        i0 = min(int(np.floor(src)), n_in - 1)
        i1 = min(i0 + 1, n_in - 1)
        wgt = src - i0
        A[i, i0] += 1.0 - wgt
        A[i, i1] += wgt
    return A


def bilinear_resize(x, out_h, out_w, *, row_tile=None):
    """F.interpolate(mode='bilinear', align_corners=True): fused height+width kernel."""
    N, H, W, C = x.shape
    if (out_h, out_w) == (H, W):
        return x
    if row_tile is None:
        row_tile = _RESIZE_TILE
    A = _interp_matrix(out_h, H)                       # (out_h, H)
    Bm = _interp_matrix(out_w, W)                      # (out_w, W)
    TH = _choose_tile(out_h, row_tile)
    n_t = _cdiv(out_h, TH)
    Ht = n_t * TH
    if Ht != out_h:
        A = np.concatenate([A, np.zeros((Ht - out_h, H), np.float32)], axis=0)
    A3 = jnp.asarray(A.reshape(n_t, TH, H))
    Bj = jnp.asarray(Bm)
    x2 = x.astype(jnp.bfloat16).reshape(N, H, W * C)
    y = pl.pallas_call(
        partial(_resize_kernel, TH=TH, W=W, C=C, OW=out_w),
        grid=(N, n_t),
        in_specs=[pl.BlockSpec((1, H, W * C), lambda n, t: (n, 0, 0)),
                  pl.BlockSpec((1, TH, H), lambda n, t: (t, 0, 0)),
                  pl.BlockSpec((out_w, W), lambda n, t: (0, 0))],
        out_specs=pl.BlockSpec((1, TH, out_w, C), lambda n, t: (n, t, 0, 0)),
        out_shape=jax.ShapeDtypeStruct((N, Ht, out_w, C), jnp.float32),
        compiler_params=_cp("parallel", "parallel"),
    )(x2, A3, Bj)
    return y if Ht == out_h else y[:, :out_h]


def adapter_branch(feat, ap, *, row_tile=None):
    """CBAM adapter: CAM (tiny, XLA) -> row-tiled fused SAM/split/1x1+ReLU kernel ->
    3x3 conv + ReLU -> 1x1 conv."""
    N, H, W, C = feat.shape
    if row_tile is None:
        row_tile = _ADPT_TILE

    # --- ChannelAttentionEnhancement: global avg/max pool + shared MLP (tiny, XLA) ----
    avg = jnp.mean(feat, axis=(1, 2))                  # (N, C)
    mx = jnp.max(feat, axis=(1, 2))
    h_a = jnp.maximum(avg @ ap["cam_w1"], 0.0)
    h_m = jnp.maximum(mx @ ap["cam_w1"], 0.0)
    cam = jax.nn.sigmoid(h_a @ ap["cam_w2"] + h_m @ ap["cam_w2"]).reshape(N, 1, C)

    # --- row-tiled SAM + split + first 1x1 conv, DMA'd 3-row halo slabs ---------------
    TH = _choose_tile(H, row_tile)
    n_t = _cdiv(H, TH)
    Ht = n_t * TH
    TIN = TH + 6
    fp = jnp.pad(feat.astype(jnp.bfloat16), ((0, 0), (3, 3 + Ht - H), (0, 0), (0, 0)))
    y = pl.pallas_call(
        partial(_adapter_sam_kernel, TH=TH, W=W, C=C, n_tiles=n_t),
        grid=(N, n_t),
        in_specs=[pl.BlockSpec(memory_space=pl.ANY),
                  pl.BlockSpec((1, 1, C), lambda n, t: (n, 0, 0)),
                  pl.BlockSpec(memory_space=pltpu.MemorySpace.SMEM),   # 7x7 SAM scalars
                  pl.BlockSpec((3 * C, 3 * C), lambda n, t: (0, 0)),
                  pl.BlockSpec((1, 3 * C), lambda n, t: (0, 0))],
        out_specs=pl.BlockSpec((1, TH, W, 3 * C), lambda n, t: (n, t, 0, 0)),
        out_shape=jax.ShapeDtypeStruct((N, Ht, W, 3 * C), jnp.float32),
        scratch_shapes=[pltpu.VMEM((2, TIN, W, C), jnp.bfloat16),
                        pltpu.SemaphoreType.DMA((2,))],
        compiler_params=_cp("parallel", "arbitrary"),
    )(fp, cam, ap["sam_w"], ap["ac1_w"].astype(jnp.bfloat16), ap["ac1_b"])
    if Ht != H:
        y = y[:, :H]
    h = conv2d(y, ap["ac2_w"], ap["ac2_b"], padding=1, act="relu")
    h = conv2d(h, ap["ac3_w"], ap["ac3_b"], padding=0)
    return h


def output_head(x, P, *, row_tile=None):
    """Fused output_conv2 (3x3+ReLU -> 1x1+ReLU) with a lane-dense (N, H, W) output."""
    N, H, W, Cin = x.shape
    Cmid = P["out2a_w"].shape[-1]
    if row_tile is None:
        row_tile = _CONV_TILE
    TH = _choose_tile(H, row_tile, mult=8)
    n_t = _cdiv(H, TH)
    Ht = n_t * TH
    TIN = TH + 2
    xp = jnp.pad(x.astype(jnp.bfloat16), ((0, 0), (1, 1 + Ht - H), (1, 1), (0, 0)))
    w1 = P["out2a_w"].reshape(3, 3 * Cin, Cmid).astype(jnp.bfloat16)
    y = pl.pallas_call(
        partial(_out_head_kernel, TH=TH, W=W, Cin=Cin, Cmid=Cmid, n_tiles=n_t),
        grid=(N, n_t),
        in_specs=[pl.BlockSpec(memory_space=pl.ANY),
                  pl.BlockSpec((3, 3 * Cin, Cmid), lambda n, t: (0, 0, 0)),
                  pl.BlockSpec((1, Cmid), lambda n, t: (0, 0)),
                  pl.BlockSpec((1, Cmid), lambda n, t: (0, 0)),
                  pl.BlockSpec(memory_space=pltpu.MemorySpace.SMEM)],
        out_specs=pl.BlockSpec((1, TH, W), lambda n, t: (n, t, 0)),
        out_shape=jax.ShapeDtypeStruct((N, Ht, W), jnp.float32),
        scratch_shapes=[pltpu.VMEM((2, TIN, W + 2, Cin), jnp.bfloat16),
                        pltpu.SemaphoreType.DMA((2,))],
        compiler_params=_cp("parallel", "arbitrary"),
    )(xp, w1, P["out2a_b"], P["out2b_w"], P["out2b_b"].reshape(-1))
    return y if Ht == H else y[:, :H]


def residual_conv_unit(x, p):
    h = conv2d(x, p["conv1_w"], p["conv1_b"], padding=1, pre_relu=True)
    h = conv2d(h, p["conv2_w"], p["conv2_b"], padding=1, pre_relu=True, residual=x)
    return h


def fusion_block(p, x0, x1=None, size=None):
    out = x0
    if x1 is not None:
        out = out + residual_conv_unit(x1, p["rcu1"])
    out = residual_conv_unit(out, p["rcu2"])
    if size is None:
        size = (out.shape[1] * 2, out.shape[2] * 2)
    out = bilinear_resize(out, int(size[0]), int(size[1]))
    out = conv2d(out, p["out_w"], p["out_b"], padding=0)
    return out


# ----------------------------------------------------------------------------
# Parameter init (deterministic, synthetic)
# ----------------------------------------------------------------------------
class _Init:
    def __init__(self, key):
        self._key = key

    def __call__(self, *shape, scale=0.05):
        self._key, sub = jax.random.split(self._key)
        return jax.random.normal(sub, shape, jnp.float32) * scale


def init_dpt_params(key, in_channels, out_channels, features, ratio=16):
    g = _Init(key)
    P = {}
    P["projects"] = [dict(w=g(1, 1, in_channels, oc), b=g(1, oc)) for oc in out_channels]

    c0, c1, c3 = out_channels[0], out_channels[1], out_channels[3]
    P["resize0"] = dict(w=g(c0, 4 * 4 * c0), b=jnp.tile(g(c0), (4 * 4,)).reshape(1, -1))
    P["resize1"] = dict(w=g(c1, 2 * 2 * c1), b=jnp.tile(g(c1), (2 * 2,)).reshape(1, -1))
    P["resize3"] = dict(w=g(3, 3, c3, c3), b=g(1, c3))

    P["adapters"] = []
    for i in (0, 1):
        C = out_channels[i]
        Cr = max(C // ratio, 1)
        P["adapters"].append(dict(
            cam_w1=g(C, Cr), cam_w2=g(Cr, C),
            sam_w=g(7 * 7 * 2),                         # [(kh*7+kw)*2 + {mean, max}]
            ac1_w=g(3 * C, 3 * C), ac1_b=g(1, 3 * C),
            ac2_w=g(3, 3, 3 * C, 3 * C), ac2_b=g(1, 3 * C),
            ac3_w=g(1, 1, 3 * C, C), ac3_b=g(1, C),
        ))

    P["layer_rn"] = [dict(w=g(3, 3, out_channels[i], features),
                          b=jnp.zeros((1, features), jnp.float32)) for i in range(4)]

    def rcu():
        return dict(conv1_w=g(3, 3, features, features), conv1_b=g(1, features),
                    conv2_w=g(3, 3, features, features), conv2_b=g(1, features))

    P["refinenets"] = [dict(rcu1=rcu(), rcu2=rcu(),
                            out_w=g(1, 1, features, features), out_b=g(1, features))
                       for _ in range(4)]

    hf2 = 32
    P["out1_w"] = g(3, 3, features, features // 2)
    P["out1_b"] = g(1, features // 2)
    P["out2a_w"] = g(3, 3, features // 2, hf2)
    P["out2a_b"] = g(1, hf2)
    P["out2b_w"] = g(1, hf2)
    P["out2b_b"] = g(1, 1)
    return P


# ----------------------------------------------------------------------------
# DPTHead forward (nclass == 1, use_bn == False, use_clstoken == False)
# ----------------------------------------------------------------------------
def dpt_head_forward(P, out_features, patch_h, patch_w):
    B = out_features[0].shape[0]
    in_ch = out_features[0].shape[-1]

    outs = []
    for i, x in enumerate(out_features):
        # tokens (B, ph*pw, C) -> NHWC (B, ph, pw, C)  (== torch permute+reshape in NCHW)
        x = x.reshape(B, patch_h, patch_w, in_ch)
        x = conv2d(x, P["projects"][i]["w"], P["projects"][i]["b"], padding=0)
        if i == 0:
            x = conv_transpose_same(x, P["resize0"]["w"], P["resize0"]["b"], 4)
        elif i == 1:
            x = conv_transpose_same(x, P["resize1"]["w"], P["resize1"]["b"], 2)
        elif i == 3:
            x = conv2d(x, P["resize3"]["w"], P["resize3"]["b"], stride=2, padding=1)
        outs.append(x)

    adapter_feature = []
    for i, feat in enumerate(outs):
        if i in (0, 1):                      # Adapter_conv is Identity for i = 2, 3
            feat = adapter_branch(feat, P["adapters"][i])
        adapter_feature.append(feat)

    l1, l2, l3, l4 = adapter_feature
    l1rn = conv2d(l1, P["layer_rn"][0]["w"], P["layer_rn"][0]["b"], padding=1)
    l2rn = conv2d(l2, P["layer_rn"][1]["w"], P["layer_rn"][1]["b"], padding=1)
    l3rn = conv2d(l3, P["layer_rn"][2]["w"], P["layer_rn"][2]["b"], padding=1)
    l4rn = conv2d(l4, P["layer_rn"][3]["w"], P["layer_rn"][3]["b"], padding=1)

    path4 = fusion_block(P["refinenets"][3], l4rn, None, size=l3rn.shape[1:3])
    path3 = fusion_block(P["refinenets"][2], path4, l3rn, size=l2rn.shape[1:3])
    path2 = fusion_block(P["refinenets"][1], path3, l2rn, size=l1rn.shape[1:3])
    path1 = fusion_block(P["refinenets"][0], path2, l1rn, size=None)

    out = conv2d(path1, P["out1_w"], P["out1_b"], padding=1)
    out = bilinear_resize(out, int(patch_h * 14), int(patch_w * 14))
    depth = output_head(out, P)[..., None]              # lane-dense (N, H, W) + free reshape
    return depth, adapter_feature


# ----------------------------------------------------------------------------
if __name__ == "__main__":
    B, patch_h, patch_w = 2, 4, 4
    in_channels = 32
    out_channels = [32, 32, 32, 32]
    features = 16

    params = init_dpt_params(jax.random.PRNGKey(1), in_channels, out_channels, features)

    key = jax.random.PRNGKey(0)
    keys = jax.random.split(key, 4)
    out_features = [jax.random.normal(keys[i], (B, patch_h * patch_w, in_channels),
                                      jnp.float32) for i in range(4)]

    out, adapter_feats = dpt_head_forward(params, out_features, patch_h, patch_w)
    out = jax.block_until_ready(out)
    for f in adapter_feats:
        jax.block_until_ready(f)

    assert out.shape == (B, patch_h * 14, patch_w * 14, 1)
    assert adapter_feats[0].shape == (B, patch_h * 4, patch_w * 4, out_channels[0])
    assert adapter_feats[1].shape == (B, patch_h * 2, patch_w * 2, out_channels[1])
    assert adapter_feats[2].shape == (B, patch_h, patch_w, out_channels[2])
    assert adapter_feats[3].shape == (B, patch_h // 2, patch_w // 2, out_channels[3])
    print("KERNEL_OK")
</pallas_src>

<mosaic_0001>
module attributes {stable_mosaic.version = 11 : i64} {
  func.func @_matmul_kernel(%arg0: i32, %arg1: memref<32x32xf32, #tpu.memory_space<vmem>>, %arg2: memref<32x32xbf16, #tpu.memory_space<vmem>>, %arg3: memref<1x32xf32, #tpu.memory_space<vmem>>, %arg4: memref<32x32xf32, #tpu.memory_space<vmem>>) attributes {dimension_semantics = [#tpu.dimension_semantics<parallel>], iteration_bounds = array<i64: 1>, scalar_prefetch = 0 : i64, scratch_operands = 0 : i64, tpu.core_type = #tpu.core_type<tc>, window_params = [{transform_indices = @transform_0, window_bounds = array<i64: 32, 32>}, {pipeline_mode = #tpu.pipeline_mode<synchronous>, transform_indices = @transform_1, window_bounds = array<i64: 32, 32>}, {pipeline_mode = #tpu.pipeline_mode<synchronous>, transform_indices = @transform_2, window_bounds = array<i64: 1, 32>}, {transform_indices = @transform_3, window_bounds = array<i64: 32, 32>}]} {
    %c0 = arith.constant 0 : index
    %c0_0 = arith.constant 0 : index
    %0 = vector.load %arg1[%c0, %c0_0] : memref<32x32xf32, #tpu.memory_space<vmem>>, vector<32x32xf32>
    %1 = arith.truncf %0 : vector<32x32xf32> to vector<32x32xbf16>
    %c0_1 = arith.constant 0 : index
    %c0_2 = arith.constant 0 : index
    %2 = vector.load %arg2[%c0_1, %c0_2] : memref<32x32xbf16, #tpu.memory_space<vmem>>, vector<32x32xbf16>
    %cst = arith.constant dense<0.000000e+00> : vector<32x32xf32>
    %3 = tpu.matmul %1, %2, %cst {dimension_numbers = #tpu.dot_dimension_numbers<[1], [0], [0], [1], [0, 0, 1, 1], [], []>} : vector<32x32xbf16>, vector<32x32xbf16>, vector<32x32xf32> -> vector<32x32xf32>
    %c0_3 = arith.constant 0 : index
    %c0_4 = arith.constant 0 : index
    %4 = vector.load %arg3[%c0_3, %c0_4] : memref<1x32xf32, #tpu.memory_space<vmem>>, vector<1x32xf32>
    %5 = vector.shape_cast %4 : vector<1x32xf32> to vector<32xf32>
    %6 = vector.shape_cast %5 : vector<32xf32> to vector<1x32xf32>
    %7 = vector.broadcast %6 : vector<1x32xf32> to vector<32x32xf32>
    %8 = arith.addf %3, %7 : vector<32x32xf32>
    %c0_5 = arith.constant 0 : index
    %c0_6 = arith.constant 0 : index
    %9 = vector.load %arg4[%c0_5, %c0_6] : memref<32x32xf32, #tpu.memory_space<vmem>>, vector<32x32xf32>
    tpu.vector_store %arg4[%c0_5, %c0_6], %8 {strides = array<i32>} : memref<32x32xf32, #tpu.memory_space<vmem>>, vector<32x32xf32>,
    return
  }
  func.func @transform_0(%arg0: i32) -> (i32, i32) {
    %c0_i32 = arith.constant 0 : i32
    %c0_i32_0 = arith.constant 0 : i32
    return %arg0, %c0_i32 : i32, i32
  }
  func.func @transform_1(%arg0: i32) -> (i32, i32) {
    %c0_i32 = arith.constant 0 : i32
    %c0_i32_0 = arith.constant 0 : i32
    %c0_i32_1 = arith.constant 0 : i32
    return %c0_i32, %c0_i32_0 : i32, i32
  }
  func.func @transform_2(%arg0: i32) -> (i32, i32) {
    %c0_i32 = arith.constant 0 : i32
    %c0_i32_0 = arith.constant 0 : i32
    %c0_i32_1 = arith.constant 0 : i32
    return %c0_i32, %c0_i32_0 : i32, i32
  }
  func.func @transform_3(%arg0: i32) -> (i32, i32) {
    %c0_i32 = arith.constant 0 : i32
    %c0_i32_0 = arith.constant 0 : i32
    return %arg0, %c0_i32 : i32, i32
  }
}

</mosaic_0001>

<bundles_post_ra>
// kernel: tpu_custom_call.1
= control target key start
LH: loop header
LB: loop body
LE: loop exit
PB: predicated region body
PF: predicated region fallthrough
CT: control target
= control target key end

     0   :  { %8 = vsyncpa [#allocation3], 0  ;;  %s275_s0 = inlined_call_operand.hbm [shape: f32[32,32], index: 0, kind: input, shape index: {}]   ;;  %s276_s1 = inlined_call_operand.hbm [shape: bf16[32,32], index: 1, kind: input, shape index: {}]   ;;  %s277_s2 = inlined_call_operand.vmem [shape: f32[1,32], index: 2, kind: input, shape index: {}]   ;;  %s278_s3 = inlined_call_operand.hbm [shape: f32[32,32], index: 3, kind: output, shape index: {}]  }
   0x1   :  { %9 = vsyncpa [#allocation6], 0 }
   0x2   :  { %10 = vsyncpa [#allocation4], 0  ;;  %s15_s14 = sshll.u32 %s275_s0, 4  ;;  %s224_s15 = smov [#allocation2]   ;;  %s16_s14 = int_to_ptr.hbm [resolvable:$true] %s15_s14 }
   0x3   :  { %s17_s16 = sshll.u32 %s224_s15, 4  ;;  %s28_s19 = sshll.u32 %s276_s1, 4  ;;  %s18_s16 = int_to_ptr.vmem [resolvable:$true] %s17_s16  ;;  %s29_s19 = int_to_ptr.hbm [resolvable:$true] %s28_s19 }
   0x4   :  { %s225_s20 = smov 128   ;;  %s226_s21 = smov 8  }
   0x5   :  { %23 = dma.hbm_to_vmem [thread:$0]  %s16_s14, 512, %s18_s16, [#allocation3], %s225_s20, %s225_s20, %s226_s21  }
   0x6   :  { %s227_s22 = smov [#allocation5]   ;;  %s228_s24 = smov 64  }
   0x7   :  { %s30_s23 = sshll.u32 %s227_s22, 4  ;;  %s229_s0 = smov 4   ;;  %s31_s23 = int_to_ptr.vmem [resolvable:$true] %s30_s23 }
   0x8   :  { %36 = dma.hbm_to_vmem [thread:$0]  %s29_s19, 256, %s31_s23, [#allocation6], %s228_s24, %s228_s24, %s229_s0  }
   0x9   :  { %218 = dma.done.wait [#allocation3], 512  }
   0xa   :  { %219 = vsyncadd [#allocation3], 4294966784 }
   0xb   :  { %220 = dma.done.wait [#allocation6], 256  }
   0xc   :  { %221 = vsyncadd [#allocation6], 4294967040  ;;  %v135_v0 = vld [vmem:[#allocation5 + $0x8] sm:$0xff]  ;;  %v134_v1 = vld [vmem:[#allocation5] sm:$0xff]  ;;  %vm74_vm0 = vcmask 261120   ;;  %s230_s26 = smov [#allocation7]  }
   0xd   :  { %v48_v2 = vld [vmem:[#allocation2] sm:$0xff]  ;;  %v49_v3 = vld [vmem:[#allocation2 + $0x8] sm:$0xff]  ;;  %87 = vmatpush.bf16.msra.mxu0 %v135_v0  ;;  %136 = vmatpush.bf16.msra.mxu1 %v135_v0  ;;  %v50_v4 = vld [vmem:[#allocation2 + $0x10] sm:$0xff]  ;;  %s108_s27 = sshll.u32 %s230_s26, 4  ;;  %s110_s30 = sshll.u32 %s278_s3, 4  ;;  %s109_s27 = int_to_ptr.vmem [resolvable:$true] %s108_s27  ;;  %s111_s30 = int_to_ptr.hbm [resolvable:$true] %s110_s30 }
   0xe   :  { %v51_v5 = vld [vmem:[#allocation2 + $0x18] sm:$0xff]  ;;  %v52_v6 = vpack.c.bf16 %v49_v3, %v48_v2  ;;  %v145_v8 = vld [vmem:[%s277_s2] ss:$0 sm:$0xff] }
   0xf   :  { %v53_v7 = vpack.c.bf16 %v51_v5, %v50_v4 }
  0x11   :  { %88 = vmatpush.bf16.msra.mxu0 %v134_v1  ;;  %137 = vmatpush.bf16.msra.mxu1 %v134_v1 }
  0x14   :  { %132 = vmatmul.msk.bf16.vlgmr.msra.gmra.mxu0 %vm74_vm0, %v52_v6  ;;  %133 = vmatmul.msk.bf16.vlgmr.msra.gmra.mxu1 %vm74_vm0, %v53_v7 }
  0x91   :  { %v90_v9 = vpop.f32.mrf.mxu0  ;;  %v95_v10 = vpop.f32.mrf.mxu1 }
  0x92   :  { %v91_v11 = vadd.f32 %v145_v8, %v90_v9  ;;  %v96_v12 = vadd.f32 %v145_v8, %v95_v10 }
  0x94   :  { %100 = vst.msk [vmem:[#allocation7] sm:$0xff] %vm74_vm0, %v91_v11 }
  0x95   :  { %102 = vst.msk [vmem:[#allocation7 + $0x10] sm:$0xff] %vm74_vm0, %v96_v12 }
  0x99   :  { %v92_v13 = vpop.f32.mrf.mxu0  ;;  %v97_v14 = vpop.f32.mrf.mxu1 }
  0x9a   :  { %v93_v15 = vadd.f32 %v145_v8, %v92_v13  ;;  %v98_v16 = vadd.f32 %v145_v8, %v97_v14 }
  0x9c   :  { %101 = vst.msk [vmem:[#allocation7 + $0x8] sm:$0xff] %vm74_vm0, %v93_v15 }
  0x9d   :  { %103 = vst.msk [vmem:[#allocation7 + $0x18] sm:$0xff] %vm74_vm0, %v98_v16 }
  0x9e   :  { %116 = dma.vmem_to_hbm [thread:$0]  %s109_s27, 512, %s111_s30, [#allocation4], %s225_s20, %s225_s20, %s226_s21  }
  0x9f   :  { %222 = dma.done.wait [#allocation4], 512  }
  0xa0   :  { %223 = vsyncadd [#allocation4], 4294966784 }
  0xa1   :  { %121 = vsyncpa [#allocation3], 1 }
  0xa2   :  { %122 = vsyncpa [#allocation6], 1 }
  0xa3   :  { %123 = vsyncpa [#allocation4], 1 }

</bundles_post_ra>
